<compile_context>
chip_gen: v6e
topology: v6e:2x2x1
jax: 0.10.0
libtpu: 0.0.40
codegen_flags: <defaults>
</compile_context>

<pallas_src>
import jax
import jax.numpy as jnp
from jax import lax
from jax.experimental import pallas as pl
from jax.experimental.pallas import tpu as pltpu


_LEAKY_SLOPE = 0.01          # PyTorch F.leaky_relu default negative_slope
_MAX_BATCH_TILE = 4096       # review: 2048-4096 sweet spot; VMEM-aware shrink below
_SUBLANE = 16                # bf16 sublane packing -> batch tile multiple of 16
_VMEM_TILE_BUDGET = 24 << 20 # per-tile working-set budget (fits v7x 64 MiB w/ headroom)


def _round_up(n, m):
    return ((n + m - 1) // m) * m


def _vmem_estimate(tb, F, H):
    """Rough per-step VMEM working set (bytes) for a (tb, F) bf16 x tile."""
    return (2 * tb * F * 2          # double-buffered bf16 x tile
            + tb * H * (4 + 2)      # h1 f32 + bf16 copy
            + tb * 128 * (4 + 2)    # h2 f32 + bf16 copy
            + tb * 4 * 4            # logits/sigmoid f32 + double-buffered out block
            + (64 << 10))           # resident weights/biases (double-buffered, tiny)


def _choose_batch_tile(B, F, H):
    """Pick (tb, num_tiles): tb multiple of 16, VMEM-bounded, >=2 tiles when B is
    big enough so the "parallel" grid axis can be split across v7x's 2 TCs."""
    max_tile = _MAX_BATCH_TILE
    while max_tile > _SUBLANE and _vmem_estimate(max_tile, F, H) > _VMEM_TILE_BUDGET:
        max_tile //= 2
    min_tiles = max(-(-B // max_tile), 2 if B >= 2 * _SUBLANE else 1)
    tb = _round_up(-(-B // min_tiles), _SUBLANE)
    num_tiles = -(-B // tb)
    return tb, num_tiles


def _discriminator_kernel(x_ref, w1_ref, b1_ref, w2_ref, b2_ref, w3_ref, b3_ref,
                          out_ref):
    # fc1 + leaky_relu: bf16 MXU operands (x already bf16), f32 accum/activations.
    x = x_ref[...]                                                   # (TB, F) bf16
    h1 = jnp.dot(x, w1_ref[...],
                 preferred_element_type=jnp.float32) + b1_ref[...]   # (TB, H) f32
    h1 = jnp.where(h1 >= 0, h1, _LEAKY_SLOPE * h1)

    # fc2 + leaky_relu
    h2 = jnp.dot(h1.astype(jnp.bfloat16), w2_ref[...],
                 preferred_element_type=jnp.float32) + b2_ref[...]   # (TB, 128) f32
    h2 = jnp.where(h2 >= 0, h2, _LEAKY_SLOPE * h2)

    # fc3: contract w3 (stored as a (1, 128) row) against h2's last dim so the
    # result is a lane-dense (1, TB) row (full-lane vst) and the MXU sees the batch
    # as the N dimension (~TB/256 pushes) instead of an MXU-hostile (TB, 1) column.
    logits = lax.dot_general(
        w3_ref[...], h2.astype(jnp.bfloat16),
        dimension_numbers=(((1,), (1,)), ((), ())),
        preferred_element_type=jnp.float32) + b3_ref[...]            # (1, TB) f32

    # Numerically stable sigmoid (no exp overflow); exp + approx reciprocal both
    # run on the otherwise-idle EUP slot.
    e = jnp.exp(-jnp.abs(logits))
    inv = pl.reciprocal(1.0 + e, approx=True)
    sig = jnp.where(logits >= 0, inv, e * inv)                       # (1, TB) f32

    out_ref[0] = sig                                                 # block (1,1,TB)


def discriminator_forward(x, params):
    """x: (B, input_size) float; params: dict from init_params (pre-transposed)."""
    w1, b1 = params["w1"], params["b1"]
    w2, b2 = params["w2"], params["b2"]
    w3, b3 = params["w3"], params["b3"]

    B, F = x.shape
    H = w1.shape[1]

    tb, num_tiles = _choose_batch_tile(B, F, H)
    b_pad = tb * num_tiles

    # Stream x as bf16 (halves the dominant HBM stream); pad batch to the tile grid.
    x = x.astype(jnp.bfloat16)
    if b_pad != B:
        x = jnp.pad(x, ((0, b_pad - B), (0, 0)))

    flops = 2 * b_pad * (F * H + H * 128 + 128)
    bytes_accessed = (b_pad * F * 2                                   # bf16 x
                      + sum(int(p.size) * p.dtype.itemsize
                            for p in (w1, b1, w2, b2, w3, b3))
                      + b_pad * 4)                                    # f32 out

    vmem_limit = int(min(48 << 20, max(16 << 20, 2 * _vmem_estimate(tb, F, H))))

    full = lambda a: pl.BlockSpec(a.shape, lambda i: (0, 0))   # resident weights

    out = pl.pallas_call(
        _discriminator_kernel,
        out_shape=jax.ShapeDtypeStruct((num_tiles, 1, tb), jnp.float32),
        grid=(num_tiles,),
        in_specs=[pl.BlockSpec((tb, F), lambda i: (i, 0)),     # x tiles (pipelined)
                  full(w1), full(b1), full(w2), full(b2), full(w3), full(b3)],
        out_specs=pl.BlockSpec((1, 1, tb), lambda i: (i, 0, 0)),
        compiler_params=pltpu.CompilerParams(
            dimension_semantics=("parallel",),                 # megacore on v7x
            vmem_limit_bytes=vmem_limit),
        cost_estimate=pl.CostEstimate(flops=flops,
                                      transcendentals=b_pad,
                                      bytes_accessed=bytes_accessed),
    )(x, w1, b1, w2, b2, w3, b3)

    # Lane-dense slab (num_tiles, 1, tb) -> (B, 1); output is tiny, reshape is free.
    return out.reshape(b_pad)[:B].reshape(B, 1)


def init_params(key, input_size, hidden_size):
    """Same shapes/init law as the PyTorch module; weights stored pre-transposed
    as (in_features, out_features) in bf16, biases in f32.
    fc3's weight is stored as a (1, 128) row (w3.T) for the lane-dense kernel."""
    ks = jax.random.split(key, 6)

    def lin(kw, kb, fan_in, fan_out):
        bound = float(fan_in) ** -0.5
        w = jax.random.uniform(kw, (fan_in, fan_out), jnp.float32, -bound, bound)
        b = jax.random.uniform(kb, (1, fan_out), jnp.float32, -bound, bound)
        return w, b

    w1, b1 = lin(ks[0], ks[1], input_size, hidden_size)
    w2, b2 = lin(ks[2], ks[3], hidden_size, 128)
    w3, b3 = lin(ks[4], ks[5], 128, 1)
    return {
        "w1": w1.astype(jnp.bfloat16), "b1": b1,
        "w2": w2.astype(jnp.bfloat16), "b2": b2,
        "w3": w3.T.astype(jnp.bfloat16), "b3": b3.reshape(1, 1),
    }


def _reference_forward(x, p):
    """Pure-JAX reference mirroring the kernel's dtype choices (bf16 MXU operands,
    f32 accumulation/activations)."""
    xb = x.astype(jnp.bfloat16)
    h1 = jnp.dot(xb, p["w1"], preferred_element_type=jnp.float32) + p["b1"]
    h1 = jnp.where(h1 >= 0, h1, _LEAKY_SLOPE * h1)
    h2 = jnp.dot(h1.astype(jnp.bfloat16), p["w2"],
                 preferred_element_type=jnp.float32) + p["b2"]
    h2 = jnp.where(h2 >= 0, h2, _LEAKY_SLOPE * h2)
    logits = jnp.dot(h2.astype(jnp.bfloat16), p["w3"].T,
                     preferred_element_type=jnp.float32) + p["b3"]
    return jax.nn.sigmoid(logits)


if __name__ == "__main__":
    input_size = 75
    hidden_size = 32
    batch = 8

    key = jax.random.PRNGKey(0)
    kx, kp = jax.random.split(key)
    x = jax.random.normal(kx, (batch, input_size), jnp.float32)
    params = init_params(kp, input_size, hidden_size)

    out = discriminator_forward(x, params)
    out = jax.block_until_ready(out)

    ref = _reference_forward(x, params)
    assert out.shape == (batch, 1)
    max_err = float(jnp.max(jnp.abs(out - ref)))
    assert max_err < 1e-2, f"max abs err vs reference: {max_err}"

    print("KERNEL_OK")
</pallas_src>

<mosaic_0001>
module attributes {stable_mosaic.version = 11 : i64} {
  func.func @_discriminator_kernel(%arg0: i32, %arg1: memref<16x75xbf16, #tpu.memory_space<vmem>>, %arg2: memref<75x32xbf16, #tpu.memory_space<vmem>>, %arg3: memref<1x32xf32, #tpu.memory_space<vmem>>, %arg4: memref<32x128xbf16, #tpu.memory_space<vmem>>, %arg5: memref<1x128xf32, #tpu.memory_space<vmem>>, %arg6: memref<1x128xbf16, #tpu.memory_space<vmem>>, %arg7: memref<1x1xf32, #tpu.memory_space<vmem>>, %arg8: memref<1x1x16xf32, #tpu.memory_space<vmem>>) attributes {dimension_semantics = [#tpu.dimension_semantics<parallel>], iteration_bounds = array<i64: 1>, scalar_prefetch = 0 : i64, scratch_operands = 0 : i64, tpu.core_type = #tpu.core_type<tc>, window_params = [{transform_indices = @transform_0, window_bounds = array<i64: 16, 75>}, {pipeline_mode = #tpu.pipeline_mode<synchronous>, transform_indices = @transform_1, window_bounds = array<i64: 75, 32>}, {pipeline_mode = #tpu.pipeline_mode<synchronous>, transform_indices = @transform_2, window_bounds = array<i64: 1, 32>}, {pipeline_mode = #tpu.pipeline_mode<synchronous>, transform_indices = @transform_3, window_bounds = array<i64: 32, 128>}, {pipeline_mode = #tpu.pipeline_mode<synchronous>, transform_indices = @transform_4, window_bounds = array<i64: 1, 128>}, {pipeline_mode = #tpu.pipeline_mode<synchronous>, transform_indices = @transform_5, window_bounds = array<i64: 1, 128>}, {pipeline_mode = #tpu.pipeline_mode<synchronous>, transform_indices = @transform_6, window_bounds = array<i64: 1, 1>}, {transform_indices = @transform_7, window_bounds = array<i64: 1, 1, 16>}]} {
    %c0 = arith.constant 0 : index
    %c0_0 = arith.constant 0 : index
    %0 = vector.load %arg1[%c0, %c0_0] : memref<16x75xbf16, #tpu.memory_space<vmem>>, vector<16x75xbf16>
    %c0_1 = arith.constant 0 : index
    %c0_2 = arith.constant 0 : index
    %1 = vector.load %arg2[%c0_1, %c0_2] : memref<75x32xbf16, #tpu.memory_space<vmem>>, vector<75x32xbf16>
    %cst = arith.constant dense<0.000000e+00> : vector<16x32xf32>
    %2 = tpu.matmul %0, %1, %cst {dimension_numbers = #tpu.dot_dimension_numbers<[1], [0], [0], [1], [0, 0, 1, 1], [], []>} : vector<16x75xbf16>, vector<75x32xbf16>, vector<16x32xf32> -> vector<16x32xf32>
    %c0_3 = arith.constant 0 : index
    %c0_4 = arith.constant 0 : index
    %3 = vector.load %arg3[%c0_3, %c0_4] : memref<1x32xf32, #tpu.memory_space<vmem>>, vector<1x32xf32>
    %4 = vector.broadcast %3 : vector<1x32xf32> to vector<16x32xf32>
    %5 = arith.addf %2, %4 : vector<16x32xf32>
    %cst_5 = arith.constant 0.000000e+00 : f32
    %6 = vector.broadcast %cst_5 : f32 to vector<16x32xf32>
    %7 = arith.cmpf oge, %5, %6 : vector<16x32xf32>
    %cst_6 = arith.constant 0.00999999977 : f32
    %8 = vector.broadcast %cst_6 : f32 to vector<16x32xf32>
    %9 = arith.mulf %8, %5 : vector<16x32xf32>
    %10 = arith.select %7, %5, %9 : vector<16x32xi1>, vector<16x32xf32>
    %11 = arith.truncf %10 : vector<16x32xf32> to vector<16x32xbf16>
    %c0_7 = arith.constant 0 : index
    %c0_8 = arith.constant 0 : index
    %12 = vector.load %arg4[%c0_7, %c0_8] : memref<32x128xbf16, #tpu.memory_space<vmem>>, vector<32x128xbf16>
    %cst_9 = arith.constant dense<0.000000e+00> : vector<16x128xf32>
    %13 = tpu.matmul %11, %12, %cst_9 {dimension_numbers = #tpu.dot_dimension_numbers<[1], [0], [0], [1], [0, 0, 1, 1], [], []>} : vector<16x32xbf16>, vector<32x128xbf16>, vector<16x128xf32> -> vector<16x128xf32>
    %c0_10 = arith.constant 0 : index
    %c0_11 = arith.constant 0 : index
    %14 = vector.load %arg5[%c0_10, %c0_11] : memref<1x128xf32, #tpu.memory_space<vmem>>, vector<1x128xf32>
    %15 = vector.broadcast %14 : vector<1x128xf32> to vector<16x128xf32>
    %16 = arith.addf %13, %15 : vector<16x128xf32>
    %cst_12 = arith.constant 0.000000e+00 : f32
    %17 = vector.broadcast %cst_12 : f32 to vector<16x128xf32>
    %18 = arith.cmpf oge, %16, %17 : vector<16x128xf32>
    %cst_13 = arith.constant 0.00999999977 : f32
    %19 = vector.broadcast %cst_13 : f32 to vector<16x128xf32>
    %20 = arith.mulf %19, %16 : vector<16x128xf32>
    %21 = arith.select %18, %16, %20 : vector<16x128xi1>, vector<16x128xf32>
    %c0_14 = arith.constant 0 : index
    %c0_15 = arith.constant 0 : index
    %22 = vector.load %arg6[%c0_14, %c0_15] : memref<1x128xbf16, #tpu.memory_space<vmem>>, vector<1x128xbf16>
    %23 = arith.truncf %21 : vector<16x128xf32> to vector<16x128xbf16>
    %cst_16 = arith.constant dense<0.000000e+00> : vector<1x16xf32>
    %24 = tpu.matmul %22, %23, %cst_16 {dimension_numbers = #tpu.dot_dimension_numbers<[1], [1], [0], [0], [0, 0, 1, 0], [], []>} : vector<1x128xbf16>, vector<16x128xbf16>, vector<1x16xf32> -> vector<1x16xf32>
    %c0_17 = arith.constant 0 : index
    %c0_18 = arith.constant 0 : index
    %25 = vector.load %arg7[%c0_17, %c0_18] : memref<1x1xf32, #tpu.memory_space<vmem>>, vector<1x1xf32>
    %26 = vector.broadcast %25 : vector<1x1xf32> to vector<1x16xf32>
    %27 = arith.addf %24, %26 : vector<1x16xf32>
    %28 = math.absf %27 : vector<1x16xf32>
    %cst_19 = arith.constant 0.000000e+00 : f32
    %29 = vector.broadcast %cst_19 : f32 to vector<1x16xf32>
    %30 = arith.subf %29, %28 : vector<1x16xf32>
    %31 = math.exp %30 : vector<1x16xf32>
    %cst_20 = arith.constant 1.000000e+00 : f32
    %32 = vector.broadcast %cst_20 : f32 to vector<1x16xf32>
    %33 = arith.addf %32, %31 : vector<1x16xf32>
    %34 = tpu.reciprocal %33 {approx = true} : vector<1x16xf32> -> vector<1x16xf32>
    %cst_21 = arith.constant 0.000000e+00 : f32
    %35 = vector.broadcast %cst_21 : f32 to vector<1x16xf32>
    %36 = arith.cmpf oge, %27, %35 : vector<1x16xf32>
    %37 = arith.mulf %31, %34 : vector<1x16xf32>
    %38 = arith.select %36, %34, %37 : vector<1x16xi1>, vector<1x16xf32>
    %c0_22 = arith.constant 0 : index
    %c0_23 = arith.constant 0 : index
    %c0_24 = arith.constant 0 : index
    %39 = vector.load %arg8[%c0_22, %c0_23, %c0_24] : memref<1x1x16xf32, #tpu.memory_space<vmem>>, vector<1x1x16xf32>
    %40 = vector.shape_cast %39 : vector<1x1x16xf32> to vector<1x16xf32>
    %41 = vector.shape_cast %38 : vector<1x16xf32> to vector<1x1x16xf32>
    tpu.vector_store %arg8[%c0_22, %c0_23, %c0_24], %41 {strides = array<i32>} : memref<1x1x16xf32, #tpu.memory_space<vmem>>, vector<1x1x16xf32>,
    return
  }
  func.func @transform_0(%arg0: i32) -> (i32, i32) {
    %c0_i32 = arith.constant 0 : i32
    %c0_i32_0 = arith.constant 0 : i32
    return %arg0, %c0_i32 : i32, i32
  }
  func.func @transform_1(%arg0: i32) -> (i32, i32) {
    %c0_i32 = arith.constant 0 : i32
    %c0_i32_0 = arith.constant 0 : i32
    %c0_i32_1 = arith.constant 0 : i32
    return %c0_i32, %c0_i32_0 : i32, i32
  }
  func.func @transform_2(%arg0: i32) -> (i32, i32) {
    %c0_i32 = arith.constant 0 : i32
    %c0_i32_0 = arith.constant 0 : i32
    %c0_i32_1 = arith.constant 0 : i32
    return %c0_i32, %c0_i32_0 : i32, i32
  }
  func.func @transform_3(%arg0: i32) -> (i32, i32) {
    %c0_i32 = arith.constant 0 : i32
    %c0_i32_0 = arith.constant 0 : i32
    %c0_i32_1 = arith.constant 0 : i32
    return %c0_i32, %c0_i32_0 : i32, i32
  }
  func.func @transform_4(%arg0: i32) -> (i32, i32) {
    %c0_i32 = arith.constant 0 : i32
    %c0_i32_0 = arith.constant 0 : i32
    %c0_i32_1 = arith.constant 0 : i32
    return %c0_i32, %c0_i32_0 : i32, i32
  }
  func.func @transform_5(%arg0: i32) -> (i32, i32) {
    %c0_i32 = arith.constant 0 : i32
    %c0_i32_0 = arith.constant 0 : i32
    %c0_i32_1 = arith.constant 0 : i32
    return %c0_i32, %c0_i32_0 : i32, i32
  }
  func.func @transform_6(%arg0: i32) -> (i32, i32) {
    %c0_i32 = arith.constant 0 : i32
    %c0_i32_0 = arith.constant 0 : i32
    %c0_i32_1 = arith.constant 0 : i32
    return %c0_i32, %c0_i32_0 : i32, i32
  }
  func.func @transform_7(%arg0: i32) -> (i32, i32, i32) {
    %c0_i32 = arith.constant 0 : i32
    %c0_i32_0 = arith.constant 0 : i32
    %c0_i32_1 = arith.constant 0 : i32
    return %arg0, %c0_i32, %c0_i32_0 : i32, i32, i32
  }
}

</mosaic_0001>

<bundles_post_ra>
// kernel: tpu_custom_call.1
= control target key start
LH: loop header
LB: loop body
LE: loop exit
PB: predicated region body
PF: predicated region fallthrough
CT: control target
= control target key end

     0   :  { %s471_s0 = inlined_call_operand.vmem [shape: bf16[16,75], index: 0, kind: input, shape index: {}]   ;;  %s472_s1 = inlined_call_operand.vmem [shape: bf16[75,32], index: 1, kind: input, shape index: {}]   ;;  %s473_s2 = inlined_call_operand.vmem [shape: f32[1,32], index: 2, kind: input, shape index: {}]   ;;  %s474_s3 = inlined_call_operand.vmem [shape: bf16[32,128], index: 3, kind: input, shape index: {}]   ;;  %s475_s4 = inlined_call_operand.vmem [shape: f32[1,128], index: 4, kind: input, shape index: {}]   ;;  %s476_s5 = inlined_call_operand.vmem [shape: bf16[1,128], index: 5, kind: input, shape index: {}]   ;;  %s477_s6 = inlined_call_operand.<no memory space> [shape: f32[1,1], index: 6, kind: input, shape index: {}]   ;;  %s478_s7 = inlined_call_operand.hbm [shape: f32[1,1,16], index: 7, kind: output, shape index: {}]  }
   0x1   :  { %v12_v0 = vstv %s477_s6 }
   0x2   :  { %13 = vst [vmem:[#allocation2] sm:$0x1] %v12_v0 }
   0x3   :  { %vm87_vm0 = vcmask 1044480   ;;  %v384_v1 = vmov 0.0   ;;  %v350_v2 = vld [vmem:[%s472_s1 + $0x20] sm:$0x3f]   ;;  %vm88_vm1 = vcmask 1045504   ;;  %v385_v3 = vmov 65535  }
   0x4   :  { %316 = vmatprep.subr.bf16.mxu0 %v384_v1  ;;  %330 = vmatprep.subr.bf16.mxu1 %v384_v1  ;;  %v89_v4 = vsel %vm87_vm0, 4294967295, %v385_v3  ;;  %vm386_vm2 = vmmov 0   ;;  %v351_v7 = vld [vmem:[%s472_s1 + $0x18] sm:$0xff]  }
   0x5   :  { %v90_v5 = vsel %vm88_vm1, %v89_v4, 0  ;;  %326 = vmatprep.mubr.msk.bf16.mxu0 %vm386_vm2, %v384_v1  ;;  %334 = vmatprep.mubr.msk.bf16.mxu1 %vm386_vm2, %v384_v1 }
   0x6   :  { %v92_v6 = vand.u32 %v350_v2, %v90_v5 }
   0x8   :  { %317 = vmatpush3.bf16.msra.mxu0 %v92_v6 }
   0x9   :  { %318 = vmatprep.subr.bf16.mxu0 %v384_v1 }
   0xa   :  { %14 = vsyncpa [#allocation4], 0  ;;  %v352_v8 = vld [vmem:[%s472_s1 + $0x10] sm:$0xff]   ;;  %v353_v9 = vld [vmem:[%s472_s1 + $0x8] sm:$0xff]   ;;  %vm83_vm3 = vcmask 613376   ;;  %vm165_vm6 = vcmask 261120   ;;  %v224_v41 = vlaneseq }
   0xb   :  { %v354_v10 = vld [vmem:[%s472_s1] sm:$0xff]   ;;  %v356_v12 = vld [vmem:[%s474_s3 + $0x8] sm:$0xff]   ;;  %v387_v27 = vmov 0   ;;  %vm277_vm9 = vcmask 122880  }
   0xc   :  { %319 = vmatpush3.bf16.msra.mxu0 %v351_v7  ;;  %v355_v11 = vld [vmem:[%s471_s0] sm:$0xff]   ;;  %331 = vmatpush3.bf16.msra.mxu1 %v356_v12  ;;  %v225_v42 = vshrl.u32 %v224_v41, 7 }
   0xd   :  { %320 = vmatprep.subr.bf16.mxu0 %v384_v1  ;;  %332 = vmatprep.subr.bf16.mxu1 %v384_v1  ;;  %v357_v13 = vld [vmem:[%s474_s3] sm:$0xff]  }
   0xe   :  { %v293_v14 = vld [vmem:[%s473_s2] ss:$0 sm:$0xff]  ;;  %349 = vset.pattern.permute.xlu0 %v387_v27  ;;  %v226_v43 = vsub.s32 0, %v225_v42 }
   0xf   :  { %v218_v26 = vld [vmem:[#allocation2] sm:$0x1] }
  0x10   :  { %321 = vmatpush3.bf16.msra.mxu0 %v352_v8  ;;  %333 = vmatpush3.bf16.msra.mxu1 %v357_v13  ;;  %v301_v28 = vld [vmem:[%s475_s4] ss:$0 sm:$0xff]  ;;  %s388_s4 = smov [#allocation3]  }
  0x11   :  { %322 = vmatprep.subr.bf16.mxu0 %v384_v1  ;;  %338 = vmatprep.subr.bf16.mxu1 %v384_v1  ;;  %v216_v40 = vld [vmem:[%s476_s5] sm:$0x1]  ;;  %s285_s5 = sshll.u32 %s388_s4, 4  ;;  %s286_s5 = int_to_ptr.vmem [resolvable:$true] %s285_s5 }
  0x12   :  { %221 = vperm.xlu0 %349, %v218_v26   ;;  %s362_s20 = scalar_lea.vmem %s286_s5, 16  ;;  %s366_s21 = scalar_lea.vmem %s286_s5, 32 }
  0x13   :  { %p363_p0 = scmp.ne.s32.totalorder %s286_s5, %s362_s20  ;;  %p367_p1 = scmp.lt.s32.totalorder %s286_s5, %s286_s5 }
  0x14   :  { %323 = vmatpush3.bf16.msra.mxu0 %v353_v9  ;;  %p368_p2 = scmp.lt.s32.totalorder %s366_s21, %s362_s20 }
  0x15   :  { %324 = vmatprep.subr.bf16.mxu0 %v384_v1 }
  0x16   :  { %p369_p3 = por %p368_p2, %p367_p1 }
  0x18   :  { %325 = vmatpush3.bf16.msra.mxu0 %v354_v10  ;;  %p370_p4 = pnand %p369_p3, %p363_p0 }
  0x1b   :  { %327 = vmatmul.mubr.msk.bf16.vlgmr.msra.gmra.mxu0 %vm83_vm3, %v355_v11 }
  0x8d   :  { %v222_v44 = vpop.permute.xlu0 %221 }
  0x8e   :  { %v227_v45 = vrot.slane %v222_v44, %v226_v43 }
  0xdb   :  { %v128_v15 = vpop.f32.mrf.mxu0 }
  0xdc   :  { %v129_v16 = vadd.f32 %v293_v14, %v128_v15 }
  0xdd   :  { %v328_v17 = vpop.f32.mrf.mxu0 }
  0xde   :  { %v137_v19 = vmul.f32 0.01, %v129_v16  ;;  %vm135_vm4 = vcmp.ge.f32.partialorder %v129_v16, 0.0 }
  0xdf   :  { %v131_v18 = vpop.f32.mrf.mxu0 }
  0xe0   :  { %v132_v20 = vadd.f32 %v293_v14, %v131_v18  ;;  %v139_v23 = vsel %vm135_vm4, %v129_v16, %v137_v19 }
  0xe1   :  { %v329_v21 = vpop.f32.mrf.mxu0 }
  0xe2   :  { %vm136_vm5 = vcmp.ge.f32.partialorder %v132_v20, 0.0  ;;  %v138_v22 = vmul.f32 0.01, %v132_v20 }
  0xe4   :  { %v140_v24 = vsel %vm136_vm5, %v132_v20, %v138_v22 }
  0xe5   :  { %v141_v25 = vpack.c.bf16 %v140_v24, %v139_v23 }
  0xe7   :  { %335 = vmatmul.mubr.msk.bf16.vlgmr.msra.gmra.mxu1 %vm165_vm6, %v141_v25 }
  0xe8   :  { %340 = vmatprep.mubr.msk.bf16.mxu1 %vm386_vm2, %v384_v1 }
 0x1a7   :  { %v203_v29 = vpop.f32.mrf.mxu1 }
 0x1a8   :  { %v204_v30 = vadd.f32 %v301_v28, %v203_v29 }
 0x1a9   :  { %v336_v31 = vpop.f32.mrf.mxu1 }
 0x1aa   :  { %v212_v33 = vmul.f32 0.01, %v204_v30  ;;  %vm210_vm7 = vcmp.ge.f32.partialorder %v204_v30, 0.0 }
 0x1ab   :  { %v206_v32 = vpop.f32.mrf.mxu1 }
 0x1ac   :  { %v207_v34 = vadd.f32 %v301_v28, %v206_v32  ;;  %v214_v37 = vsel %vm210_vm7, %v204_v30, %v212_v33 }
 0x1ad   :  { %v337_v35 = vpop.f32.mrf.mxu1 }
 0x1ae   :  { %vm211_vm8 = vcmp.ge.f32.partialorder %v207_v34, 0.0  ;;  %v213_v36 = vmul.f32 0.01, %v207_v34 }
 0x1b0   :  { %v215_v38 = vsel %vm211_vm8, %v207_v34, %v213_v36 }
 0x1b1   :  { %v217_v39 = vpack.c.bf16 %v215_v38, %v214_v37 }
 0x1b3   :  { %339 = vmatpush3.bf16.xpose.msra.mxu1 %v217_v39 }
 0x1ba   :  { %341 = vmatmul.mubr.bf16.vlgmr.msra.gmra.mxu1 %v216_v40 }
 0x27a   :  { %v262_v46 = vpop.f32.mrf.mxu1 }
 0x27b   :  { %v263_v47 = vadd.f32 %v262_v46, %v227_v45 }
 0x27c   :  { %v342_v48 = vpop.f32.mrf.mxu1 }
 0x27d   :  { %v268_v49 = vand.u32 2147483647, %v263_v47  ;;  %vm274_vm10 = vcmp.ge.f32.partialorder %v263_v47, 0.0 }
 0x27e   :  { %v265_v50 = vpop.f32.mrf.mxu1 }
 0x27f   :  { %v269_v51 = vsub.f32 0.0, %v268_v49 }
 0x280   :  { %v343_v52 = vpop.f32.mrf.mxu1 }
 0x281   :  { %v270_v53 = vmul.f32 1.442695, %v269_v51 }
 0x283   :  { %358 = vpow2.f32 %v270_v53 }
 0x290   :  { %v359_v54 = vpop.eup %358 }
 0x291   :  { %v272_v55 = vadd.f32 1.0, %v359_v54 }
 0x293   :  { %360 = vrcp.f32 %v272_v55 }
 0x2a0   :  { %v361_v56 = vpop.eup %360 }
 0x2a1   :  { %v275_v57 = vmul.f32 %v361_v56, %v359_v54 }
 0x2a3   :  { %v276_v58 = vsel %vm274_vm10, %v361_v56, %v275_v57 }
 0x2a4   :  { %278 = vst.msk [vmem:[#allocation3] sm:$0x1] %vm277_vm9, %v276_v58 }
 0x2a5   :  { %373 = shalt.err (!%p370_p4)
}
 0x2a6   :  { %288 = dma.vmem_to_hbm [thread:$0]  %s286_s5, 16, %s478_s7, [#allocation4]  }
 0x2a7   :  { %382 = dma.done.wait [#allocation4], 16  }
 0x2a8   :  { %383 = vsyncadd [#allocation4], 4294967280 }
 0x2a9   :  { %292 = vsyncpa [#allocation4], 1 }

</bundles_post_ra>
